<compile_context>
chip_gen: v6e
topology: v6e:2x2x1
jax: 0.10.0
libtpu: 0.0.40
codegen_flags: <defaults>
</compile_context>

<pallas_src>
from functools import partial

import jax
import jax.numpy as jnp
from jax.experimental import pallas as pl
from jax.experimental.pallas import tpu as pltpu


def _round_up(n: int, m: int) -> int:
    return ((n + m - 1) // m) * m


def _alzheimer_kernel(x_ref, w1_ref, b1_ref, w2_ref, b2_ref, o_ref, *,
                      activation: str):
    # x_ref : (TB, D_in)   w1_ref : (D_in, H)   b1_ref : (1, H)
    # w2_ref: (1, H)       b2_ref : (1,) SMEM   o_ref  : (1, TB)  lane-dense
    x = x_ref[...]

    # Hidden linear layer on the MXU, f32 accumulation; bias broadcast once.
    h = jnp.dot(x, w1_ref[...], preferred_element_type=jnp.float32)
    h = h + b1_ref[...]

    # Activation in f32 (VPU / EUP; v5e has no bf16 VPU path).
    if activation == 'relu':
        h = jnp.maximum(h, 0.0)
    elif activation == 'tanh':
        h = jnp.tanh(h)
    elif activation == 'silu':
        h = h * jax.nn.sigmoid(h)

    # Output layer has N=1: VPU multiply + XLU lane reduction instead of a
    # 1-column MXU matmul.  The (TB,) -> (1, TB) relayout costs one XLU
    # transpose per tile; it hides under the HBM-bound x DMA (free filler).
    logit = jnp.sum(h * w2_ref[...], axis=-1) + b2_ref[0]
    o_ref[...] = jax.nn.sigmoid(logit)[None, :].astype(o_ref.dtype)


def _physical_vmem_bytes() -> int:
    """Physical VMEM of this generation (safe v7x-sized fallback)."""
    default = 64 * 1024 * 1024
    try:
        info = pltpu.get_tpu_info()
    except Exception:
        return default
    for name in ("vmem_capacity_bytes", "vmem_size_bytes", "vmem_bytes"):
        v = getattr(info, name, None)
        if isinstance(v, int) and v > 0:
            return v
    return default


def _choose_batch_tile(d_in: int, hidden: int, max_tile: int,
                       vmem_budget: int, x_itemsize: int) -> int:
    """Largest power-of-two batch tile (multiple of 128) whose double-buffered
    x/out tiles plus the double-buffered resident weights fit the budget.
    Accounting uses the real VMEM footprint: minor dims lane-pad to 128,
    second-minor dims sublane-pad to 8."""
    d_lanes = _round_up(d_in, 128)      # x tile minor dim lane-pads to 128
    h_lanes = _round_up(hidden, 128)
    d_sub = _round_up(d_in, 8)
    # w1 + b1 + w2, each double-buffered by BlockSpec (constant index or not).
    weight_bytes = 2 * (d_sub * h_lanes + 8 * h_lanes + 8 * h_lanes) * 4

    def total_bytes(tb: int) -> int:
        x_bytes = 2 * tb * d_lanes * x_itemsize          # double-buffered x tile
        out_bytes = 2 * 8 * tb * 4                       # (1,TB) pads to 8 sublanes
        return x_bytes + out_bytes + weight_bytes

    tb = 128
    while tb * 2 <= max_tile and total_bytes(tb * 2) <= vmem_budget:
        tb *= 2
    return tb


def alzheimer_net_forward(x, w1, b1, w2, b2, activation='relu',
                          max_batch_tile=32768, x_dtype=jnp.float32):
    """x: (B, D_in).  Weights in (in, out) layout:
       w1 (D_in, H), b1 (1, H) or (H,), w2 (H, 1) or (H,), b2 scalar-sized.
       Returns (B, 1) float32 probabilities."""
    if activation not in ('relu', 'tanh', 'silu'):
        raise ValueError(f"unsupported activation: {activation}")

    B, D_in = x.shape
    H = w1.shape[1]
    assert w1.shape == (D_in, H)
    assert b1.size == H and w2.size == H and b2.size == 1

    # x (and w1) may stream as bf16 for ~2x fewer HBM bytes; epilogue stays f32.
    x = x.astype(x_dtype)
    w1 = w1.astype(x_dtype)
    b1 = jnp.reshape(b1, (1, H)).astype(jnp.float32)
    w2 = jnp.reshape(w2, (1, H)).astype(jnp.float32)   # row vector for VPU reduce
    b2 = jnp.reshape(b2, (1,)).astype(jnp.float32)      # scalar -> SMEM

    # Generation-dependent VMEM sizing (v5e/v6e: 128 MiB, v7x: 64 MiB/TC).
    vmem_cap = _physical_vmem_bytes()
    vmem_budget = int(vmem_cap * 0.70)
    vmem_limit = int(vmem_cap * 0.85)

    TB = _choose_batch_tile(D_in, H, max_batch_tile, vmem_budget,
                            jnp.dtype(x_dtype).itemsize)
    if B <= TB:
        TB = B                                 # single full-extent block
        grid = (1,)
    else:
        grid = (pl.cdiv(B, TB),)               # partial last tile, no pad copy

    kernel = partial(_alzheimer_kernel, activation=activation)

    out = pl.pallas_call(
        kernel,
        out_shape=jax.ShapeDtypeStruct((1, B), jnp.float32),
        grid=grid,
        in_specs=[
            pl.BlockSpec((TB, D_in), lambda i: (i, 0)),           # x: streamed per tile
            pl.BlockSpec((D_in, H), lambda i: (0, 0)),            # w1: VMEM-resident
            pl.BlockSpec((1, H), lambda i: (0, 0)),               # b1: VMEM-resident
            pl.BlockSpec((1, H), lambda i: (0, 0)),               # w2 row: VMEM-resident
            pl.BlockSpec(memory_space=pltpu.MemorySpace.SMEM),    # b2 scalar
        ],
        out_specs=pl.BlockSpec((1, TB), lambda i: (0, i)),        # lane-dense output
        compiler_params=pltpu.CompilerParams(
            dimension_semantics=("parallel",),
            vmem_limit_bytes=vmem_limit,
        ),
    )(x, w1, b1, w2, b2)

    return out[0].reshape(B, 1)


def init_params(key, input_size, hidden_size):
    """Deterministic synthetic parameters (shapes match the nn.Module)."""
    k1, k2, k3, k4 = jax.random.split(key, 4)
    s1 = 1.0 / jnp.sqrt(jnp.float32(input_size))
    s2 = 1.0 / jnp.sqrt(jnp.float32(hidden_size))
    w1 = jax.random.uniform(k1, (input_size, hidden_size), jnp.float32, -s1, s1)
    b1 = jax.random.uniform(k2, (1, hidden_size), jnp.float32, -s1, s1)
    w2 = jax.random.uniform(k3, (hidden_size, 1), jnp.float32, -s2, s2)
    b2 = jax.random.uniform(k4, (1, 1), jnp.float32, -s2, s2)
    return w1, b1, w2, b2


if __name__ == "__main__":
    key = jax.random.PRNGKey(0)
    k_x, k_p, k_x2 = jax.random.split(key, 3)

    input_size, hidden_size = 16, 32
    w1, b1, w2, b2 = init_params(k_p, input_size, hidden_size)

    def reference(x, activation):
        h = x @ w1 + b1
        if activation == 'relu':
            h = jnp.maximum(h, 0.0)
        elif activation == 'tanh':
            h = jnp.tanh(h)
        elif activation == 'silu':
            h = h * jax.nn.sigmoid(h)
        return jax.nn.sigmoid(h @ w2 + b2)

    # Case 1: tiny batch, single full-extent block, all activations.
    x_small = jax.random.normal(k_x, (8, input_size), jnp.float32)
    for act in ('relu', 'tanh', 'silu'):
        out = jax.block_until_ready(
            alzheimer_net_forward(x_small, w1, b1, w2, b2, activation=act))
        ref = reference(x_small, act)
        assert out.shape == (8, 1)
        assert jnp.allclose(out, ref, atol=1e-5), f"mismatch vs reference ({act})"

    # Case 2: multi-tile batch with an uneven last tile — exercises grid>1,
    # the partial (masked) last block, lane-dense streamed output and the
    # parallel batch axis, all without any wrapper-side padding copies.
    x_big = jax.random.normal(k_x2, (300, input_size), jnp.float32)
    out = jax.block_until_ready(
        alzheimer_net_forward(x_big, w1, b1, w2, b2, activation='relu',
                              max_batch_tile=128))
    ref = reference(x_big, 'relu')
    assert out.shape == (300, 1)
    assert jnp.allclose(out, ref, atol=1e-5), "mismatch vs reference (tiled)"

    print("KERNEL_OK")
</pallas_src>

<mosaic_0001>
module attributes {stable_mosaic.version = 11 : i64} {
  func.func @_alzheimer_kernel(%arg0: i32, %arg1: memref<8x16xf32, #tpu.memory_space<vmem>>, %arg2: memref<16x32xf32, #tpu.memory_space<vmem>>, %arg3: memref<1x32xf32, #tpu.memory_space<vmem>>, %arg4: memref<1x32xf32, #tpu.memory_space<vmem>>, %arg5: memref<1xf32, #tpu.memory_space<smem>>, %arg6: memref<1x8xf32, #tpu.memory_space<vmem>>) attributes {dimension_semantics = [#tpu.dimension_semantics<parallel>], iteration_bounds = array<i64: 1>, scalar_prefetch = 0 : i64, scratch_operands = 0 : i64, tpu.core_type = #tpu.core_type<tc>, window_params = [{transform_indices = @transform_0, window_bounds = array<i64: 8, 16>}, {pipeline_mode = #tpu.pipeline_mode<synchronous>, transform_indices = @transform_1, window_bounds = array<i64: 16, 32>}, {pipeline_mode = #tpu.pipeline_mode<synchronous>, transform_indices = @transform_2, window_bounds = array<i64: 1, 32>}, {pipeline_mode = #tpu.pipeline_mode<synchronous>, transform_indices = @transform_3, window_bounds = array<i64: 1, 32>}, {transform_indices = @transform_4, window_bounds = array<i64: 1>}, {transform_indices = @transform_5, window_bounds = array<i64: 1, 8>}]} {
    %c0 = arith.constant 0 : index
    %c0_0 = arith.constant 0 : index
    %0 = vector.load %arg1[%c0, %c0_0] : memref<8x16xf32, #tpu.memory_space<vmem>>, vector<8x16xf32>
    %c0_1 = arith.constant 0 : index
    %c0_2 = arith.constant 0 : index
    %1 = vector.load %arg2[%c0_1, %c0_2] : memref<16x32xf32, #tpu.memory_space<vmem>>, vector<16x32xf32>
    %cst = arith.constant dense<0.000000e+00> : vector<8x32xf32>
    %2 = tpu.matmul %0, %1, %cst {dimension_numbers = #tpu.dot_dimension_numbers<[1], [0], [0], [1], [0, 0, 1, 1], [], []>} : vector<8x16xf32>, vector<16x32xf32>, vector<8x32xf32> -> vector<8x32xf32>
    %c0_3 = arith.constant 0 : index
    %c0_4 = arith.constant 0 : index
    %3 = vector.load %arg3[%c0_3, %c0_4] : memref<1x32xf32, #tpu.memory_space<vmem>>, vector<1x32xf32>
    %4 = vector.broadcast %3 : vector<1x32xf32> to vector<8x32xf32>
    %5 = arith.addf %2, %4 : vector<8x32xf32>
    %cst_5 = arith.constant 0.000000e+00 : f32
    %6 = vector.broadcast %cst_5 : f32 to vector<8x32xf32>
    %7 = arith.maximumf %5, %6 : vector<8x32xf32>
    %c0_6 = arith.constant 0 : index
    %c0_7 = arith.constant 0 : index
    %8 = vector.load %arg4[%c0_6, %c0_7] : memref<1x32xf32, #tpu.memory_space<vmem>>, vector<1x32xf32>
    %9 = vector.broadcast %8 : vector<1x32xf32> to vector<8x32xf32>
    %10 = arith.mulf %7, %9 : vector<8x32xf32>
    %cst_8 = arith.constant dense<0.000000e+00> : vector<8xf32>
    %11 = vector.multi_reduction <add>, %10, %cst_8 [1] : vector<8x32xf32> to vector<8xf32>
    %c0_9 = arith.constant 0 : index
    %12 = memref.load %arg5[%c0_9] : memref<1xf32, #tpu.memory_space<smem>>
    %13 = vector.broadcast %12 : f32 to vector<8xf32>
    %14 = arith.addf %11, %13 : vector<8xf32>
    %15 = arith.negf %14 : vector<8xf32>
    %16 = math.exp %15 : vector<8xf32>
    %cst_10 = arith.constant 1.000000e+00 : f32
    %17 = vector.broadcast %cst_10 : f32 to vector<8xf32>
    %18 = arith.addf %17, %16 : vector<8xf32>
    %19 = arith.divf %17, %18 : vector<8xf32>
    %20 = vector.shape_cast %19 : vector<8xf32> to vector<1x8xf32>
    %c0_11 = arith.constant 0 : index
    %c0_12 = arith.constant 0 : index
    %21 = vector.load %arg6[%c0_11, %c0_12] : memref<1x8xf32, #tpu.memory_space<vmem>>, vector<1x8xf32>
    tpu.vector_store %arg6[%c0_11, %c0_12], %20 {strides = array<i32>} : memref<1x8xf32, #tpu.memory_space<vmem>>, vector<1x8xf32>,
    return
  }
  func.func @transform_0(%arg0: i32) -> (i32, i32) {
    %c0_i32 = arith.constant 0 : i32
    %c0_i32_0 = arith.constant 0 : i32
    return %arg0, %c0_i32 : i32, i32
  }
  func.func @transform_1(%arg0: i32) -> (i32, i32) {
    %c0_i32 = arith.constant 0 : i32
    %c0_i32_0 = arith.constant 0 : i32
    %c0_i32_1 = arith.constant 0 : i32
    return %c0_i32, %c0_i32_0 : i32, i32
  }
  func.func @transform_2(%arg0: i32) -> (i32, i32) {
    %c0_i32 = arith.constant 0 : i32
    %c0_i32_0 = arith.constant 0 : i32
    %c0_i32_1 = arith.constant 0 : i32
    return %c0_i32, %c0_i32_0 : i32, i32
  }
  func.func @transform_3(%arg0: i32) -> (i32, i32) {
    %c0_i32 = arith.constant 0 : i32
    %c0_i32_0 = arith.constant 0 : i32
    %c0_i32_1 = arith.constant 0 : i32
    return %c0_i32, %c0_i32_0 : i32, i32
  }
  func.func @transform_4(%arg0: i32) -> i32 {
    %c0_i32 = arith.constant 0 : i32
    %c0_i32_0 = arith.constant 0 : i32
    return %c0_i32 : i32
  }
  func.func @transform_5(%arg0: i32) -> (i32, i32) {
    %c0_i32 = arith.constant 0 : i32
    %c0_i32_0 = arith.constant 0 : i32
    return %c0_i32, %arg0 : i32, i32
  }
}

</mosaic_0001>

<bundles_post_ra>
// kernel: tpu_custom_call.1
= control target key start
LH: loop header
LB: loop body
LE: loop exit
PB: predicated region body
PF: predicated region fallthrough
CT: control target
= control target key end

     0   :  { %11 = vsyncpa [#allocation4], 0  ;;  %s326_s0 = inlined_call_operand.hbm [shape: f32[8,16], index: 0, kind: input, shape index: {}]   ;;  %s327_s1 = inlined_call_operand.hbm [shape: f32[16,32], index: 1, kind: input, shape index: {}]   ;;  %s328_s2 = inlined_call_operand.vmem [shape: f32[1,32], index: 2, kind: input, shape index: {}]   ;;  %s329_s3 = inlined_call_operand.vmem [shape: f32[1,32], index: 3, kind: input, shape index: {}]   ;;  %s330_s4 = inlined_call_operand.<no memory space> [shape: f32[1], index: 4, kind: input, shape index: {}]   ;;  %s331_s5 = inlined_call_operand.hbm [shape: f32[1,8], index: 5, kind: output, shape index: {}]  }
   0x1   :  { %12 = vsyncpa [#allocation7], 0 }
   0x2   :  { %13 = vsyncpa [#allocation5], 0  ;;  %s271_s18 = smov [#allocation3]   ;;  %s272_s20 = smov [#allocation6]  }
   0x3   :  { %s20_s19 = sshll.u32 %s271_s18, 4  ;;  %s29_s21 = sshll.u32 %s272_s20, 4  ;;  %s21_s19 = int_to_ptr.vmem [resolvable:$true] %s20_s19  ;;  %s30_s21 = int_to_ptr.vmem [resolvable:$true] %s29_s21 }
   0x4   :  { %s213_s22 = scalar_lea.vmem %s21_s19, 128  ;;  %p218_p1 = scmp.lt.s32.totalorder %s21_s19, %s21_s19 }
   0x5   :  { %p214_p0 = scmp.ne.s32.totalorder %s21_s19, %s213_s22  ;;  %p219_p2 = scmp.lt.s32.totalorder %s213_s22, %s213_s22 }
   0x7   :  { %p220_p3 = por %p219_p2, %p218_p1 }
   0x9   :  { %p221_p4 = pnand %p220_p3, %p214_p0 }
   0xb   :  { %224 = shalt.err (!%p221_p4)
}
   0xc   :  { %23 = dma.hbm_to_vmem [thread:$0]  %s326_s0, 128, %s21_s19, [#allocation4]  }
   0xd   :  { %s233_s25 = scalar_lea.vmem %s30_s21, 256  ;;  %p238_p6 = scmp.lt.s32.totalorder %s30_s21, %s30_s21 }
   0xe   :  { %p234_p5 = scmp.ne.s32.totalorder %s30_s21, %s233_s25  ;;  %p239_p7 = scmp.lt.s32.totalorder %s233_s25, %s233_s25 }
  0x10   :  { %p240_p8 = por %p239_p7, %p238_p6 }
  0x12   :  { %p241_p9 = pnand %p240_p8, %p234_p5 }
  0x14   :  { %244 = shalt.err (!%p241_p9)
}
  0x15   :  { %s273_s26 = smov 128   ;;  %s274_s27 = smov 8  }
  0x16   :  { %35 = dma.hbm_to_vmem [thread:$0]  %s327_s1, 256, %s30_s21, [#allocation7], %s273_s26, %s273_s26, %s274_s27  }
  0x17   :  { %265 = dma.done.wait [#allocation4], 128  }
  0x18   :  { %266 = vsyncadd [#allocation4], 4294967168 }
  0x19   :  { %267 = dma.done.wait [#allocation7], 256  }
  0x1a   :  { %268 = vsyncadd [#allocation7], 4294967040  ;;  %v275_v0 = vmov 0.0   ;;  %vm276_vm0 = vmmov 0   ;;  %v50_v1 = vld [vmem:[#allocation6 + $0x8] sm:$0xff]  ;;  %v49_v2 = vld [vmem:[#allocation6] sm:$0xff]  ;;  %v146_v12 = vstv %s330_s4  ;;  %v155_v18 = vlaneseq }
  0x1b   :  { %187 = vmatprep.subr.mxu0 %v275_v0  ;;  %191 = vmatprep.mubr.msk.f32.mxu0 %vm276_vm0, %v275_v0  ;;  %v48_v3 = vld [vmem:[#allocation3] sm:$0xff]  ;;  %vm58_vm1 = vcmask 130048   ;;  %vm141_vm2 = vcmask 261120   ;;  %vm162_vm3 = vcmask 57344  }
  0x1c   :  { %188 = vmatpush3.msra.mxu0 %v50_v1  ;;  %v180_v4 = vld [vmem:[%s328_s2] ss:$0 sm:$0xff]  ;;  %v156_v19 = vand.u32 127, %v155_v18  ;;  %v158_v20 = vshrl.u32 %v155_v18, 7  ;;  %s277_s2 = smov [#allocation8]  }
  0x1d   :  { %189 = vmatprep.subr.mxu0 %v275_v0  ;;  %v182_v8 = vld [vmem:[%s329_s3] ss:$0 sm:$0xff]  ;;  %s170_s3 = sshll.u32 %s277_s2, 4  ;;  %s171_s3 = int_to_ptr.vmem [resolvable:$true] %s170_s3 }
  0x1e   :  { %190 = vmatpush3.msra.mxu0 %v49_v2  ;;  %v159_v21 = vsub.s32 %v156_v19, %v158_v20  ;;  %s245_s9 = scalar_lea.vmem %s171_s3, 16  ;;  %s249_s4 = scalar_lea.vmem %s171_s3, 32 }
  0x1f   :  { %192 = vmatmul.mubr.msk.f32.vlgmr.msra.gmra.mxu0 %vm58_vm1, %v48_v3  ;;  %p246_p10 = scmp.ne.s32.totalorder %s171_s3, %s245_s9  ;;  %p250_p11 = scmp.lt.s32.totalorder %s171_s3, %s171_s3 }
  0x20   :  { %p251_p12 = scmp.lt.s32.totalorder %s249_s4, %s245_s9 }
  0x22   :  { %p252_p13 = por %p251_p12, %p250_p11 }
  0x24   :  { %p253_p0 = pnand %p252_p13, %p246_p10 }
  0xdf   :  { %v128_v5 = vpop.f32.mrf.mxu0 }
  0xe0   :  { %v129_v6 = vadd.f32 %v180_v4, %v128_v5 }
  0xe1   :  { %v193_v7 = vpop.f32.mrf.mxu0 }
  0xe2   :  { %v132_v9 = vmax.f32 %v129_v6, 0.0 }
  0xe4   :  { %v140_v10 = vmul.f32 %v182_v8, %v132_v9 }
  0xe6   :  { %v142_v11 = vsel %vm141_vm2, %v140_v10, 0.0 }
  0xe7   :  { %143 = vadd.xlane.f32.xlu0 %v142_v11 }
 0x170   :  { %v144_v13 = vpop.xlane.xlu0 %143 }
 0x171   :  { %v147_v14 = vadd.f32 %v146_v12, %v144_v13 }
 0x173   :  { %v183_v15 = vmul.f32 -1.442695, %v147_v14 }
 0x175   :  { %201 = vpow2.f32 %v183_v15 }
 0x182   :  { %v202_v16 = vpop.eup %201 }
 0x183   :  { %v151_v17 = vadd.f32 1.0, %v202_v16 }
 0x185   :  { %203 = vrcp.f32 %v151_v17 }
 0x192   :  { %v204_v22 = vpop.eup %203 }
 0x193   :  { %v160_v23 = vrot.slane %v204_v22, %v159_v21 }
 0x195   :  { %163 = vst.msk [vmem:[#allocation8] sm:$0x1] %vm162_vm3, %v160_v23 }
 0x196   :  { %256 = shalt.err (!%p253_p0)
}
 0x197   :  { %173 = dma.vmem_to_hbm [thread:$0]  %s171_s3, 16, %s331_s5, [#allocation5]  }
 0x198   :  { %269 = dma.done.wait [#allocation5], 16  }
 0x199   :  { %270 = vsyncadd [#allocation5], 4294967280 }
 0x19a   :  { %177 = vsyncpa [#allocation4], 1 }
 0x19b   :  { %178 = vsyncpa [#allocation7], 1 }
 0x19c   :  { %179 = vsyncpa [#allocation5], 1 }

</bundles_post_ra>
